<compile_context>
chip_gen: v6e
topology: v6e:2x2x1
jax: 0.10.0
libtpu: 0.0.40
codegen_flags: <defaults>
</compile_context>

<pallas_src>
import functools

import jax
import jax.numpy as jnp
from jax.experimental import pallas as pl
from jax.experimental.pallas import tpu as pltpu

ENCODING_EDGE = 32
HIDDEN_EDGE = 64

LEAKY_SLOPE = 0.01   # torch.nn.LeakyReLU default
BN_EPS = 1e-5        # torch.nn.BatchNorm1d default


def _round_up(x, m):
    return ((x + m - 1) // m) * m


def _leaky(h):
    return jnp.where(h >= 0.0, h, LEAKY_SLOPE * h)


def _bn_train(h):
    """Training-mode BatchNorm1d (gamma=1, beta=0), centered variance."""
    mean = jnp.mean(h, axis=0, keepdims=True)
    hc = h - mean
    var = jnp.mean(hc * hc, axis=0, keepdims=True)
    return hc * jax.lax.rsqrt(var + BN_EPS)


def _fused_row_limit():
    """Max #edge rows for the single fused kernel (h kept resident in VMEM)."""
    try:
        vmem = pltpu.get_tpu_info().vmem_capacity_bytes
    except Exception:  # pragma: no cover - conservative fallback (v7x 64 MiB)
        vmem = 64 << 20
    # ~2.3 KiB/row resident (inputs + f32 activations + temporaries); use ~1/3
    # of VMEM and cap so the 48 MiB scoped limit below is always sufficient.
    return max(1024, min(16384, (vmem // 3) // 2304))


# ---------------------------------------------------------------------------
# Fused single-kernel path: whole MLP, h1/h2 never touch HBM.
# ---------------------------------------------------------------------------
def _fused_kernel(src_ref, dst_ref, ea_ref,
                  w1s_ref, w1d_ref, w1e_ref, b1_ref,
                  w2_ref, b2_ref, w3_ref, b3_ref, o_ref):
    bf16 = jnp.bfloat16
    f32 = jnp.float32
    # cat([src, dest, edge_attr]) @ W1  ==  src@W1a + dest@W1b + ea@W1c
    h = _leaky(
        jnp.dot(src_ref[...].astype(bf16), w1s_ref[...], preferred_element_type=f32)
        + jnp.dot(dst_ref[...].astype(bf16), w1d_ref[...], preferred_element_type=f32)
        + jnp.dot(ea_ref[...].astype(bf16), w1e_ref[...], preferred_element_type=f32)
        + b1_ref[...])
    hn = _bn_train(h)
    h2 = _leaky(jnp.dot(hn.astype(bf16), w2_ref[...], preferred_element_type=f32)
                + b2_ref[...])
    hn2 = _bn_train(h2)
    o_ref[...] = (jnp.dot(hn2.astype(bf16), w3_ref[...], preferred_element_type=f32)
                  + b3_ref[...]).astype(o_ref.dtype)


# ---------------------------------------------------------------------------
# Tiled 3-pass fallback (large E).
# ---------------------------------------------------------------------------
def _masked_partial_stats(h, tile_r, n_valid):
    """Per-tile sum / sum-of-squares, excluding rows beyond the true E."""
    rid = (pl.program_id(0) * tile_r
           + jax.lax.broadcasted_iota(jnp.int32, (tile_r, 1), 0))
    hm = jnp.where(rid < n_valid, h, 0.0)
    return (jnp.sum(hm, axis=0, keepdims=True),
            jnp.sum(hm * hm, axis=0, keepdims=True))


def _lin1_leaky_stats_kernel(src_ref, dst_ref, ea_ref,
                             w1s_ref, w1d_ref, w1e_ref, b1_ref,
                             h_ref, sum_ref, ssq_ref, *, tile_r, n_valid):
    bf16 = jnp.bfloat16
    f32 = jnp.float32
    acc = (jnp.dot(src_ref[...].astype(bf16), w1s_ref[...], preferred_element_type=f32)
           + jnp.dot(dst_ref[...].astype(bf16), w1d_ref[...], preferred_element_type=f32)
           + jnp.dot(ea_ref[...].astype(bf16), w1e_ref[...], preferred_element_type=f32)
           + b1_ref[...])
    h = _leaky(acc)
    h_ref[...] = h.astype(h_ref.dtype)          # bf16 intermediate store
    s, q = _masked_partial_stats(h, tile_r, n_valid)   # stats on f32 value
    sum_ref[...] = s.reshape(sum_ref.shape)
    ssq_ref[...] = q.reshape(ssq_ref.shape)


def _bn_lin_leaky_stats_kernel(h_ref, mean_ref, istd_ref, w_ref, b_ref,
                               o_ref, sum_ref, ssq_ref, *, tile_r, n_valid):
    hn = (h_ref[...].astype(jnp.float32) - mean_ref[...]) * istd_ref[...]
    acc = jnp.dot(hn.astype(jnp.bfloat16), w_ref[...],
                  preferred_element_type=jnp.float32) + b_ref[...]
    h2 = _leaky(acc)
    o_ref[...] = h2.astype(o_ref.dtype)          # bf16 intermediate store
    s, q = _masked_partial_stats(h2, tile_r, n_valid)
    sum_ref[...] = s.reshape(sum_ref.shape)
    ssq_ref[...] = q.reshape(ssq_ref.shape)


def _bn_lin_kernel(h_ref, mean_ref, istd_ref, w_ref, b_ref, o_ref):
    hn = (h_ref[...].astype(jnp.float32) - mean_ref[...]) * istd_ref[...]
    o_ref[...] = (jnp.dot(hn.astype(jnp.bfloat16), w_ref[...],
                          preferred_element_type=jnp.float32)
                  + b_ref[...]).astype(o_ref.dtype)


def _stats_to_bn(s, q, n):
    mean = s / n
    var = jnp.maximum(q / n - mean * mean, 0.0)   # biased (training-mode) var
    return mean, jax.lax.rsqrt(var + BN_EPS)


# ---------------------------------------------------------------------------
# Wrapper: EdgeModel.forward
# ---------------------------------------------------------------------------
def edge_model_forward(params, src, dest, edge_attr, u=None, batch=None,
                       *, tile_r=4096, force_tiled=False):
    """EdgeModel.forward: u / batch are accepted but unused (as in PyTorch)."""
    del u, batch
    (w1, b1), (w2, b2), (w3, b3) = params

    e = src.shape[0]
    ds, de = src.shape[1], edge_attr.shape[1]
    hid = w1.shape[1]
    out_dim = w3.shape[1]
    f32 = jnp.float32

    # Split-weight trick + one-time bf16 cast (weights resident in VMEM).
    w1s = w1[:ds].astype(jnp.bfloat16)
    w1d = w1[ds:2 * ds].astype(jnp.bfloat16)
    w1e = w1[2 * ds:].astype(jnp.bfloat16)
    w2b = w2.astype(jnp.bfloat16)
    w3b = w3.astype(jnp.bfloat16)

    def resident(r, c):
        return pl.BlockSpec((r, c), lambda i: (0, 0))

    # ---------------- fused path: everything resident in VMEM ---------------
    if (not force_tiled) and e <= _fused_row_limit():
        return pl.pallas_call(
            _fused_kernel,
            grid=(1,),
            in_specs=[resident(e, ds), resident(e, ds), resident(e, de),
                      resident(ds, hid), resident(ds, hid), resident(de, hid),
                      resident(1, hid),
                      resident(hid, hid), resident(1, hid),
                      resident(hid, out_dim), resident(1, out_dim)],
            out_specs=resident(e, out_dim),
            out_shape=jax.ShapeDtypeStruct((e, out_dim), f32),
            compiler_params=pltpu.CompilerParams(
                dimension_semantics=("arbitrary",),
                vmem_limit_bytes=48 << 20),
        )(src, dest, edge_attr, w1s, w1d, w1e, b1, w2b, b2, w3b, b3)

    # ---------------- tiled 3-pass fallback (large E) ------------------------
    # Row tile: multiple of 16 (bf16 sublane packing), shrunk for small E.
    tile = min(_round_up(tile_r, 16), _round_up(e, 16))
    n_tiles = pl.cdiv(e, tile)

    def row_spec(f):
        return pl.BlockSpec((tile, f), lambda i: (i, 0))

    def stat_spec():
        return pl.BlockSpec((1, 1, hid), lambda i: (i, 0, 0))

    stat_shape = jax.ShapeDtypeStruct((n_tiles, 1, hid), f32)

    # ---- pass 1: Linear1 (split) + LeakyReLU + per-tile stats of h1 --------
    h1, s1, q1 = pl.pallas_call(
        functools.partial(_lin1_leaky_stats_kernel, tile_r=tile, n_valid=e),
        grid=(n_tiles,),
        in_specs=[row_spec(ds), row_spec(ds), row_spec(de),
                  resident(ds, hid), resident(ds, hid), resident(de, hid),
                  resident(1, hid)],
        out_specs=(row_spec(hid), stat_spec(), stat_spec()),
        out_shape=(jax.ShapeDtypeStruct((e, hid), jnp.bfloat16),
                   stat_shape, stat_shape),
        compiler_params=pltpu.CompilerParams(
            dimension_semantics=("parallel",)),
    )(src, dest, edge_attr, w1s, w1d, w1e, b1)
    mean1, istd1 = _stats_to_bn(jnp.sum(s1, axis=0), jnp.sum(q1, axis=0), e)

    # ---- pass 2: BN1 + Linear2 + LeakyReLU + per-tile stats of h2 ----------
    h2, s2, q2 = pl.pallas_call(
        functools.partial(_bn_lin_leaky_stats_kernel, tile_r=tile, n_valid=e),
        grid=(n_tiles,),
        in_specs=[row_spec(hid), resident(1, hid), resident(1, hid),
                  resident(hid, hid), resident(1, hid)],
        out_specs=(row_spec(hid), stat_spec(), stat_spec()),
        out_shape=(jax.ShapeDtypeStruct((e, hid), jnp.bfloat16),
                   stat_shape, stat_shape),
        compiler_params=pltpu.CompilerParams(
            dimension_semantics=("parallel",)),
    )(h1, mean1, istd1, w2b, b2)
    mean2, istd2 = _stats_to_bn(jnp.sum(s2, axis=0), jnp.sum(q2, axis=0), e)

    # ---- pass 3: BN2 + Linear3 ---------------------------------------------
    out = pl.pallas_call(
        _bn_lin_kernel,
        grid=(n_tiles,),
        in_specs=[row_spec(hid), resident(1, hid), resident(1, hid),
                  resident(hid, out_dim), resident(1, out_dim)],
        out_specs=row_spec(out_dim),
        out_shape=jax.ShapeDtypeStruct((e, out_dim), f32),
        compiler_params=pltpu.CompilerParams(
            dimension_semantics=("parallel",)),
    )(h2, mean2, istd2, w3b, b3)
    return out


# ---------------------------------------------------------------------------
# Parameter init (xavier_uniform weights, bias = 0.01, matching init_weights)
# ---------------------------------------------------------------------------
def _linear_params(key, fan_in, fan_out):
    limit = (6.0 / (fan_in + fan_out)) ** 0.5
    w = jax.random.uniform(key, (fan_in, fan_out), jnp.float32, -limit, limit)
    b = jnp.full((1, fan_out), 0.01, jnp.float32)
    return w, b


def edge_model_params(key, src_dim, edge_dim):
    k1, k2, k3 = jax.random.split(key, 3)
    in_dim = 2 * src_dim + edge_dim
    return (_linear_params(k1, in_dim, HIDDEN_EDGE),
            _linear_params(k2, HIDDEN_EDGE, HIDDEN_EDGE),
            _linear_params(k3, HIDDEN_EDGE, ENCODING_EDGE))


# ---------------------------------------------------------------------------
# Pure-JAX reference (f32) for sanity checks
# ---------------------------------------------------------------------------
def _reference(params, src, dest, edge_attr):
    (w1, b1), (w2, b2), (w3, b3) = params
    x = jnp.concatenate([src, dest, edge_attr], axis=1)
    h = _bn_train(_leaky(x @ w1 + b1))
    h = _bn_train(_leaky(h @ w2 + b2))
    return h @ w3 + b3


if __name__ == "__main__":
    key = jax.random.PRNGKey(0)
    kp, ks, kd, ke = jax.random.split(key, 4)

    # Small deterministic example: 16 edges, 64-dim node encodings, 32-dim
    # edge encodings (consistent with the surrounding GNN that feeds EdgeModel).
    E, SRC_F, EDGE_F = 16, 64, 32
    params = edge_model_params(kp, SRC_F, EDGE_F)

    src = jax.random.normal(ks, (E, SRC_F), jnp.float32)
    dest = jax.random.normal(kd, (E, SRC_F), jnp.float32)
    edge_attr = jax.random.normal(ke, (E, EDGE_F), jnp.float32)
    u = jnp.full((2, 1), 0.1, jnp.float32)            # unused by EdgeModel
    batch = jnp.array([0] * 8 + [1] * 8, jnp.int32)   # unused by EdgeModel

    # ---- fused (small-E) path ----------------------------------------------
    fwd = jax.jit(edge_model_forward)
    out = jax.block_until_ready(fwd(params, src, dest, edge_attr, u, batch))
    assert out.shape == (E, ENCODING_EDGE) and out.dtype == jnp.float32
    ref = _reference(params, src, dest, edge_attr)
    assert bool(jnp.all(jnp.isfinite(out)))
    assert bool(jnp.allclose(out, ref, atol=2e-1, rtol=2e-1))

    # ---- tiled 3-pass fallback, exercised with a ragged multi-tile grid ----
    E2 = 1000
    ks2, kd2, ke2 = jax.random.split(jax.random.PRNGKey(1), 3)
    src2 = jax.random.normal(ks2, (E2, SRC_F), jnp.float32)
    dest2 = jax.random.normal(kd2, (E2, SRC_F), jnp.float32)
    ea2 = jax.random.normal(ke2, (E2, EDGE_F), jnp.float32)
    fwd_tiled = jax.jit(
        lambda p, s, d, a, uu, bb: edge_model_forward(
            p, s, d, a, uu, bb, tile_r=256, force_tiled=True))
    out2 = jax.block_until_ready(fwd_tiled(params, src2, dest2, ea2, u, batch))
    assert out2.shape == (E2, ENCODING_EDGE) and out2.dtype == jnp.float32
    ref2 = _reference(params, src2, dest2, ea2)
    assert bool(jnp.all(jnp.isfinite(out2)))
    assert bool(jnp.allclose(out2, ref2, atol=2e-1, rtol=2e-1))

    print("KERNEL_OK")
</pallas_src>

<mosaic_0001>
module attributes {stable_mosaic.version = 11 : i64} {
  func.func @_fused_kernel(%arg0: i32, %arg1: memref<16x64xf32, #tpu.memory_space<vmem>>, %arg2: memref<16x64xf32, #tpu.memory_space<vmem>>, %arg3: memref<16x32xf32, #tpu.memory_space<vmem>>, %arg4: memref<64x64xbf16, #tpu.memory_space<vmem>>, %arg5: memref<64x64xbf16, #tpu.memory_space<vmem>>, %arg6: memref<32x64xbf16, #tpu.memory_space<vmem>>, %arg7: memref<1x64xf32, #tpu.memory_space<vmem>>, %arg8: memref<64x64xbf16, #tpu.memory_space<vmem>>, %arg9: memref<1x64xf32, #tpu.memory_space<vmem>>, %arg10: memref<64x32xbf16, #tpu.memory_space<vmem>>, %arg11: memref<1x32xf32, #tpu.memory_space<vmem>>, %arg12: memref<16x32xf32, #tpu.memory_space<vmem>>) attributes {dimension_semantics = [#tpu.dimension_semantics<arbitrary>], iteration_bounds = array<i64: 1>, scalar_prefetch = 0 : i64, scratch_operands = 0 : i64, tpu.core_type = #tpu.core_type<tc>, window_params = [{pipeline_mode = #tpu.pipeline_mode<synchronous>, transform_indices = @transform_0, window_bounds = array<i64: 16, 64>}, {pipeline_mode = #tpu.pipeline_mode<synchronous>, transform_indices = @transform_1, window_bounds = array<i64: 16, 64>}, {pipeline_mode = #tpu.pipeline_mode<synchronous>, transform_indices = @transform_2, window_bounds = array<i64: 16, 32>}, {pipeline_mode = #tpu.pipeline_mode<synchronous>, transform_indices = @transform_3, window_bounds = array<i64: 64, 64>}, {pipeline_mode = #tpu.pipeline_mode<synchronous>, transform_indices = @transform_4, window_bounds = array<i64: 64, 64>}, {pipeline_mode = #tpu.pipeline_mode<synchronous>, transform_indices = @transform_5, window_bounds = array<i64: 32, 64>}, {pipeline_mode = #tpu.pipeline_mode<synchronous>, transform_indices = @transform_6, window_bounds = array<i64: 1, 64>}, {pipeline_mode = #tpu.pipeline_mode<synchronous>, transform_indices = @transform_7, window_bounds = array<i64: 64, 64>}, {pipeline_mode = #tpu.pipeline_mode<synchronous>, transform_indices = @transform_8, window_bounds = array<i64: 1, 64>}, {pipeline_mode = #tpu.pipeline_mode<synchronous>, transform_indices = @transform_9, window_bounds = array<i64: 64, 32>}, {pipeline_mode = #tpu.pipeline_mode<synchronous>, transform_indices = @transform_10, window_bounds = array<i64: 1, 32>}, {pipeline_mode = #tpu.pipeline_mode<synchronous>, transform_indices = @transform_11, window_bounds = array<i64: 16, 32>}]} {
    %c0 = arith.constant 0 : index
    %c0_0 = arith.constant 0 : index
    %0 = vector.load %arg1[%c0, %c0_0] : memref<16x64xf32, #tpu.memory_space<vmem>>, vector<16x64xf32>
    %1 = arith.truncf %0 : vector<16x64xf32> to vector<16x64xbf16>
    %c0_1 = arith.constant 0 : index
    %c0_2 = arith.constant 0 : index
    %2 = vector.load %arg4[%c0_1, %c0_2] : memref<64x64xbf16, #tpu.memory_space<vmem>>, vector<64x64xbf16>
    %cst = arith.constant dense<0.000000e+00> : vector<16x64xf32>
    %3 = tpu.matmul %1, %2, %cst {dimension_numbers = #tpu.dot_dimension_numbers<[1], [0], [0], [1], [0, 0, 1, 1], [], []>} : vector<16x64xbf16>, vector<64x64xbf16>, vector<16x64xf32> -> vector<16x64xf32>
    %c0_3 = arith.constant 0 : index
    %c0_4 = arith.constant 0 : index
    %4 = vector.load %arg2[%c0_3, %c0_4] : memref<16x64xf32, #tpu.memory_space<vmem>>, vector<16x64xf32>
    %5 = arith.truncf %4 : vector<16x64xf32> to vector<16x64xbf16>
    %c0_5 = arith.constant 0 : index
    %c0_6 = arith.constant 0 : index
    %6 = vector.load %arg5[%c0_5, %c0_6] : memref<64x64xbf16, #tpu.memory_space<vmem>>, vector<64x64xbf16>
    %cst_7 = arith.constant dense<0.000000e+00> : vector<16x64xf32>
    %7 = tpu.matmul %5, %6, %cst_7 {dimension_numbers = #tpu.dot_dimension_numbers<[1], [0], [0], [1], [0, 0, 1, 1], [], []>} : vector<16x64xbf16>, vector<64x64xbf16>, vector<16x64xf32> -> vector<16x64xf32>
    %8 = arith.addf %3, %7 : vector<16x64xf32>
    %c0_8 = arith.constant 0 : index
    %c0_9 = arith.constant 0 : index
    %9 = vector.load %arg3[%c0_8, %c0_9] : memref<16x32xf32, #tpu.memory_space<vmem>>, vector<16x32xf32>
    %10 = arith.truncf %9 : vector<16x32xf32> to vector<16x32xbf16>
    %c0_10 = arith.constant 0 : index
    %c0_11 = arith.constant 0 : index
    %11 = vector.load %arg6[%c0_10, %c0_11] : memref<32x64xbf16, #tpu.memory_space<vmem>>, vector<32x64xbf16>
    %cst_12 = arith.constant dense<0.000000e+00> : vector<16x64xf32>
    %12 = tpu.matmul %10, %11, %cst_12 {dimension_numbers = #tpu.dot_dimension_numbers<[1], [0], [0], [1], [0, 0, 1, 1], [], []>} : vector<16x32xbf16>, vector<32x64xbf16>, vector<16x64xf32> -> vector<16x64xf32>
    %13 = arith.addf %8, %12 : vector<16x64xf32>
    %c0_13 = arith.constant 0 : index
    %c0_14 = arith.constant 0 : index
    %14 = vector.load %arg7[%c0_13, %c0_14] : memref<1x64xf32, #tpu.memory_space<vmem>>, vector<1x64xf32>
    %15 = vector.broadcast %14 : vector<1x64xf32> to vector<16x64xf32>
    %16 = arith.addf %13, %15 : vector<16x64xf32>
    %cst_15 = arith.constant 0.000000e+00 : f32
    %17 = vector.broadcast %cst_15 : f32 to vector<16x64xf32>
    %18 = arith.cmpf oge, %16, %17 : vector<16x64xf32>
    %cst_16 = arith.constant 0.00999999977 : f32
    %19 = vector.broadcast %cst_16 : f32 to vector<16x64xf32>
    %20 = arith.mulf %19, %16 : vector<16x64xf32>
    %21 = arith.select %18, %16, %20 : vector<16x64xi1>, vector<16x64xf32>
    %cst_17 = arith.constant dense<0.000000e+00> : vector<64xf32>
    %22 = vector.multi_reduction <add>, %21, %cst_17 [0] : vector<16x64xf32> to vector<64xf32>
    %23 = vector.shape_cast %22 : vector<64xf32> to vector<1x64xf32>
    %cst_18 = arith.constant 1.600000e+01 : f32
    %24 = vector.broadcast %cst_18 : f32 to vector<1x64xf32>
    %25 = arith.divf %23, %24 : vector<1x64xf32>
    %26 = vector.broadcast %25 : vector<1x64xf32> to vector<16x64xf32>
    %27 = arith.subf %21, %26 : vector<16x64xf32>
    %28 = arith.mulf %27, %27 : vector<16x64xf32>
    %cst_19 = arith.constant dense<0.000000e+00> : vector<64xf32>
    %29 = vector.multi_reduction <add>, %28, %cst_19 [0] : vector<16x64xf32> to vector<64xf32>
    %30 = vector.shape_cast %29 : vector<64xf32> to vector<1x64xf32>
    %cst_20 = arith.constant 1.600000e+01 : f32
    %31 = vector.broadcast %cst_20 : f32 to vector<1x64xf32>
    %32 = arith.divf %30, %31 : vector<1x64xf32>
    %cst_21 = arith.constant 9.99999974E-6 : f32
    %33 = vector.broadcast %cst_21 : f32 to vector<1x64xf32>
    %34 = arith.addf %32, %33 : vector<1x64xf32>
    %35 = math.rsqrt %34 : vector<1x64xf32>
    %36 = vector.broadcast %35 : vector<1x64xf32> to vector<16x64xf32>
    %37 = arith.mulf %27, %36 : vector<16x64xf32>
    %38 = arith.truncf %37 : vector<16x64xf32> to vector<16x64xbf16>
    %c0_22 = arith.constant 0 : index
    %c0_23 = arith.constant 0 : index
    %39 = vector.load %arg8[%c0_22, %c0_23] : memref<64x64xbf16, #tpu.memory_space<vmem>>, vector<64x64xbf16>
    %cst_24 = arith.constant dense<0.000000e+00> : vector<16x64xf32>
    %40 = tpu.matmul %38, %39, %cst_24 {dimension_numbers = #tpu.dot_dimension_numbers<[1], [0], [0], [1], [0, 0, 1, 1], [], []>} : vector<16x64xbf16>, vector<64x64xbf16>, vector<16x64xf32> -> vector<16x64xf32>
    %c0_25 = arith.constant 0 : index
    %c0_26 = arith.constant 0 : index
    %41 = vector.load %arg9[%c0_25, %c0_26] : memref<1x64xf32, #tpu.memory_space<vmem>>, vector<1x64xf32>
    %42 = vector.broadcast %41 : vector<1x64xf32> to vector<16x64xf32>
    %43 = arith.addf %40, %42 : vector<16x64xf32>
    %cst_27 = arith.constant 0.000000e+00 : f32
    %44 = vector.broadcast %cst_27 : f32 to vector<16x64xf32>
    %45 = arith.cmpf oge, %43, %44 : vector<16x64xf32>
    %cst_28 = arith.constant 0.00999999977 : f32
    %46 = vector.broadcast %cst_28 : f32 to vector<16x64xf32>
    %47 = arith.mulf %46, %43 : vector<16x64xf32>
    %48 = arith.select %45, %43, %47 : vector<16x64xi1>, vector<16x64xf32>
    %cst_29 = arith.constant dense<0.000000e+00> : vector<64xf32>
    %49 = vector.multi_reduction <add>, %48, %cst_29 [0] : vector<16x64xf32> to vector<64xf32>
    %50 = vector.shape_cast %49 : vector<64xf32> to vector<1x64xf32>
    %cst_30 = arith.constant 1.600000e+01 : f32
    %51 = vector.broadcast %cst_30 : f32 to vector<1x64xf32>
    %52 = arith.divf %50, %51 : vector<1x64xf32>
    %53 = vector.broadcast %52 : vector<1x64xf32> to vector<16x64xf32>
    %54 = arith.subf %48, %53 : vector<16x64xf32>
    %55 = arith.mulf %54, %54 : vector<16x64xf32>
    %cst_31 = arith.constant dense<0.000000e+00> : vector<64xf32>
    %56 = vector.multi_reduction <add>, %55, %cst_31 [0] : vector<16x64xf32> to vector<64xf32>
    %57 = vector.shape_cast %56 : vector<64xf32> to vector<1x64xf32>
    %cst_32 = arith.constant 1.600000e+01 : f32
    %58 = vector.broadcast %cst_32 : f32 to vector<1x64xf32>
    %59 = arith.divf %57, %58 : vector<1x64xf32>
    %cst_33 = arith.constant 9.99999974E-6 : f32
    %60 = vector.broadcast %cst_33 : f32 to vector<1x64xf32>
    %61 = arith.addf %59, %60 : vector<1x64xf32>
    %62 = math.rsqrt %61 : vector<1x64xf32>
    %63 = vector.broadcast %62 : vector<1x64xf32> to vector<16x64xf32>
    %64 = arith.mulf %54, %63 : vector<16x64xf32>
    %65 = arith.truncf %64 : vector<16x64xf32> to vector<16x64xbf16>
    %c0_34 = arith.constant 0 : index
    %c0_35 = arith.constant 0 : index
    %66 = vector.load %arg10[%c0_34, %c0_35] : memref<64x32xbf16, #tpu.memory_space<vmem>>, vector<64x32xbf16>
    %cst_36 = arith.constant dense<0.000000e+00> : vector<16x32xf32>
    %67 = tpu.matmul %65, %66, %cst_36 {dimension_numbers = #tpu.dot_dimension_numbers<[1], [0], [0], [1], [0, 0, 1, 1], [], []>} : vector<16x64xbf16>, vector<64x32xbf16>, vector<16x32xf32> -> vector<16x32xf32>
    %c0_37 = arith.constant 0 : index
    %c0_38 = arith.constant 0 : index
    %68 = vector.load %arg11[%c0_37, %c0_38] : memref<1x32xf32, #tpu.memory_space<vmem>>, vector<1x32xf32>
    %69 = vector.broadcast %68 : vector<1x32xf32> to vector<16x32xf32>
    %70 = arith.addf %67, %69 : vector<16x32xf32>
    %c0_39 = arith.constant 0 : index
    %c0_40 = arith.constant 0 : index
    %71 = vector.load %arg12[%c0_39, %c0_40] : memref<16x32xf32, #tpu.memory_space<vmem>>, vector<16x32xf32>
    tpu.vector_store %arg12[%c0_39, %c0_40], %70 {strides = array<i32>} : memref<16x32xf32, #tpu.memory_space<vmem>>, vector<16x32xf32>,
    return
  }
  func.func @transform_0(%arg0: i32) -> (i32, i32) {
    %c0_i32 = arith.constant 0 : i32
    %c0_i32_0 = arith.constant 0 : i32
    %c0_i32_1 = arith.constant 0 : i32
    return %c0_i32, %c0_i32_0 : i32, i32
  }
  func.func @transform_1(%arg0: i32) -> (i32, i32) {
    %c0_i32 = arith.constant 0 : i32
    %c0_i32_0 = arith.constant 0 : i32
    %c0_i32_1 = arith.constant 0 : i32
    return %c0_i32, %c0_i32_0 : i32, i32
  }
  func.func @transform_2(%arg0: i32) -> (i32, i32) {
    %c0_i32 = arith.constant 0 : i32
    %c0_i32_0 = arith.constant 0 : i32
    %c0_i32_1 = arith.constant 0 : i32
    return %c0_i32, %c0_i32_0 : i32, i32
  }
  func.func @transform_3(%arg0: i32) -> (i32, i32) {
    %c0_i32 = arith.constant 0 : i32
    %c0_i32_0 = arith.constant 0 : i32
    %c0_i32_1 = arith.constant 0 : i32
    return %c0_i32, %c0_i32_0 : i32, i32
  }
  func.func @transform_4(%arg0: i32) -> (i32, i32) {
    %c0_i32 = arith.constant 0 : i32
    %c0_i32_0 = arith.constant 0 : i32
    %c0_i32_1 = arith.constant 0 : i32
    return %c0_i32, %c0_i32_0 : i32, i32
  }
  func.func @transform_5(%arg0: i32) -> (i32, i32) {
    %c0_i32 = arith.constant 0 : i32
    %c0_i32_0 = arith.constant 0 : i32
    %c0_i32_1 = arith.constant 0 : i32
    return %c0_i32, %c0_i32_0 : i32, i32
  }
  func.func @transform_6(%arg0: i32) -> (i32, i32) {
    %c0_i32 = arith.constant 0 : i32
    %c0_i32_0 = arith.constant 0 : i32
    %c0_i32_1 = arith.constant 0 : i32
    return %c0_i32, %c0_i32_0 : i32, i32
  }
  func.func @transform_7(%arg0: i32) -> (i32, i32) {
    %c0_i32 = arith.constant 0 : i32
    %c0_i32_0 = arith.constant 0 : i32
    %c0_i32_1 = arith.constant 0 : i32
    return %c0_i32, %c0_i32_0 : i32, i32
  }
  func.func @transform_8(%arg0: i32) -> (i32, i32) {
    %c0_i32 = arith.constant 0 : i32
    %c0_i32_0 = arith.constant 0 : i32
    %c0_i32_1 = arith.constant 0 : i32
    return %c0_i32, %c0_i32_0 : i32, i32
  }
  func.func @transform_9(%arg0: i32) -> (i32, i32) {
    %c0_i32 = arith.constant 0 : i32
    %c0_i32_0 = arith.constant 0 : i32
    %c0_i32_1 = arith.constant 0 : i32
    return %c0_i32, %c0_i32_0 : i32, i32
  }
  func.func @transform_10(%arg0: i32) -> (i32, i32) {
    %c0_i32 = arith.constant 0 : i32
    %c0_i32_0 = arith.constant 0 : i32
    %c0_i32_1 = arith.constant 0 : i32
    return %c0_i32, %c0_i32_0 : i32, i32
  }
  func.func @transform_11(%arg0: i32) -> (i32, i32) {
    %c0_i32 = arith.constant 0 : i32
    %c0_i32_0 = arith.constant 0 : i32
    %c0_i32_1 = arith.constant 0 : i32
    return %c0_i32, %c0_i32_0 : i32, i32
  }
}

</mosaic_0001>

<bundles_post_ra>
// kernel: edge_model_forward.1
= control target key start
LH: loop header
LB: loop body
LE: loop exit
PB: predicated region body
PF: predicated region fallthrough
CT: control target
= control target key end

     0   :  { %v683_v1 = vmov 0.0   ;;  %vm684_vm0 = vmmov 0   ;;  %vm86_vm1 = vcmask 523264   ;;  %s875_s0 = inlined_call_operand.vmem [shape: f32[16,64], index: 0, kind: input, shape index: {}]   ;;  %s876_s1 = inlined_call_operand.vmem [shape: f32[16,64], index: 1, kind: input, shape index: {}]   ;;  %s877_s2 = inlined_call_operand.vmem [shape: f32[16,32], index: 2, kind: input, shape index: {}]   ;;  %s878_s3 = inlined_call_operand.vmem [shape: bf16[64,64], index: 3, kind: input, shape index: {}]   ;;  %s879_s4 = inlined_call_operand.vmem [shape: bf16[64,64], index: 4, kind: input, shape index: {}]   ;;  %s880_s5 = inlined_call_operand.vmem [shape: bf16[32,64], index: 5, kind: input, shape index: {}]   ;;  %s881_s6 = inlined_call_operand.vmem [shape: f32[1,64], index: 6, kind: input, shape index: {}]   ;;  %s882_s7 = inlined_call_operand.vmem [shape: bf16[64,64], index: 7, kind: input, shape index: {}]   ;;  %s883_s8 = inlined_call_operand.vmem [shape: f32[1,64], index: 8, kind: input, shape index: {}]   ;;  %s884_s9 = inlined_call_operand.vmem [shape: bf16[64,32], index: 9, kind: input, shape index: {}]   ;;  %s885_s10 = inlined_call_operand.vmem [shape: f32[1,32], index: 10, kind: input, shape index: {}]   ;;  %s886_s11 = inlined_call_operand.hbm [shape: f32[16,32], index: 11, kind: output, shape index: {}]  }
   0x1   :  { %v639_v0 = vld [vmem:[%s879_s4 + $0x18] sm:$0xff]   ;;  %578 = vmatprep.subr.bf16.mxu0 %v683_v1  ;;  %590 = vmatprep.subr.bf16.mxu1 %v683_v1  ;;  %v641_v3 = vld [vmem:[%s879_s4 + $0x10] sm:$0xff]   ;;  %v643_v5 = vld [vmem:[%s879_s4 + $0x8] sm:$0xff]  }
   0x2   :  { %v640_v2 = vld [vmem:[%s878_s3 + $0x18] sm:$0xff]   ;;  %579 = vmatpush3.bf16.msra.mxu0 %v639_v0  ;;  %586 = vmatprep.mubr.msk.bf16.mxu0 %vm684_vm0, %v683_v1  ;;  %v642_v4 = vld [vmem:[%s878_s3 + $0x10] sm:$0xff]   ;;  %v644_v6 = vld [vmem:[%s878_s3 + $0x8] sm:$0xff]  }
   0x3   :  { %591 = vmatpush3.bf16.msra.mxu1 %v640_v2  ;;  %580 = vmatprep.subr.bf16.mxu0 %v683_v1  ;;  %v645_v7 = vld [vmem:[%s879_s4] sm:$0xff]   ;;  %v52_v9 = vld [vmem:[%s876_s1 + $0x8] sm:$0xff] }
   0x4   :  { %592 = vmatprep.subr.bf16.mxu1 %v683_v1  ;;  %598 = vmatprep.mubr.msk.bf16.mxu1 %vm684_vm0, %v683_v1  ;;  %v51_v8 = vld [vmem:[%s876_s1] sm:$0xff]  ;;  %v41_v12 = vld [vmem:[%s875_s0 + $0x8] sm:$0xff] }
   0x5   :  { %v646_v10 = vld [vmem:[%s878_s3] sm:$0xff]   ;;  %v647_v13 = vld [vmem:[%s880_s5 + $0x8] sm:$0xff]   ;;  %v53_v14 = vpack.c.bf16 %v52_v9, %v51_v8 }
   0x6   :  { %581 = vmatpush3.bf16.msra.mxu0 %v641_v3  ;;  %v40_v11 = vld [vmem:[%s875_s0] sm:$0xff] }
   0x7   :  { %593 = vmatpush3.bf16.msra.mxu1 %v642_v4  ;;  %582 = vmatprep.subr.bf16.mxu0 %v683_v1  ;;  %v42_v15 = vpack.c.bf16 %v41_v12, %v40_v11 }
   0x8   :  { %594 = vmatprep.subr.bf16.mxu1 %v683_v1 }
   0xa   :  { %583 = vmatpush3.bf16.msra.mxu0 %v643_v5 }
   0xb   :  { %595 = vmatpush3.bf16.msra.mxu1 %v644_v6  ;;  %584 = vmatprep.subr.bf16.mxu0 %v683_v1 }
   0xc   :  { %596 = vmatprep.subr.bf16.mxu1 %v683_v1 }
   0xe   :  { %585 = vmatpush3.bf16.msra.mxu0 %v645_v7 }
   0xf   :  { %597 = vmatpush3.bf16.msra.mxu1 %v646_v10  ;;  %602 = vmatprep.subr.bf16.mxu0 %v683_v1 }
  0x10   :  { %610 = vmatprep.subr.bf16.mxu1 %v683_v1 }
  0x11   :  { %587 = vmatmul.mubr.msk.bf16.vlgmr.msra.gmra.mxu0 %vm86_vm1, %v53_v14 }
  0x12   :  { %16 = vsyncpa [#allocation3], 0  ;;  %599 = vmatmul.mubr.msk.bf16.vlgmr.msra.gmra.mxu1 %vm86_vm1, %v42_v15  ;;  %603 = vmatpush3.bf16.msra.mxu0 %v647_v13  ;;  %v648_v16 = vld [vmem:[%s880_s5] sm:$0xff]   ;;  %v200_v18 = vld [vmem:[%s877_s2 + $0x8] sm:$0xff]  ;;  %vm218_vm2 = vcmask 261120   ;;  %s685_s1 = smov [#allocation2]  }
  0x13   :  { %v199_v17 = vld [vmem:[%s877_s2] sm:$0xff]  ;;  %604 = vmatprep.subr.bf16.mxu0 %v683_v1  ;;  %606 = vmatprep.mubr.msk.bf16.mxu0 %vm684_vm0, %v683_v1  ;;  %v649_v20 = vld [vmem:[%s882_s7 + $0x18] sm:$0xff]   ;;  %v650_v21 = vld [vmem:[%s882_s7 + $0x10] sm:$0xff]   ;;  %s518_s0 = sshll.u32 %s685_s1, 4  ;;  %s519_s0 = int_to_ptr.vmem [resolvable:$true] %s518_s0 }
  0x14   :  { %618 = vmatprep.mubr.msk.bf16.mxu1 %vm684_vm0, %v683_v1  ;;  %v201_v19 = vpack.c.bf16 %v200_v18, %v199_v17  ;;  %611 = vmatpush3.bf16.msra.mxu1 %v649_v20  ;;  %v651_v22 = vld [vmem:[%s882_s7 + $0x8] sm:$0xff]   ;;  %v652_v23 = vld [vmem:[%s882_s7] sm:$0xff]   ;;  %v653_v13 = vld [vmem:[%s884_s9 + $0x18] sm:$0xff]   ;;  %s661_s3 = scalar_lea.vmem %s519_s0, 256  ;;  %p666_p1 = scmp.lt.s32.totalorder %s519_s0, %s519_s0 }
  0x15   :  { %612 = vmatprep.subr.bf16.mxu1 %v683_v1  ;;  %v542_v34 = vld [vmem:[%s881_s6] ss:$0 sm:$0xff]  ;;  %v654_v14 = vld [vmem:[%s884_s9 + $0x10] sm:$0xff]   ;;  %v655_v15 = vld [vmem:[%s884_s9 + $0x8] sm:$0xff]   ;;  %p662_p0 = scmp.ne.s32.totalorder %s519_s0, %s661_s3  ;;  %p667_p2 = scmp.lt.s32.totalorder %s661_s3, %s661_s3 }
  0x16   :  { %605 = vmatpush3.bf16.msra.mxu0 %v648_v16  ;;  %v656_v16 = vld [vmem:[%s884_s9] sm:$0xff]  }
  0x17   :  { %622 = vmatprep.subr.bf16.mxu0 %v683_v1  ;;  %v543_v17 = vld [vmem:[%s883_s8] ss:$0 sm:$0xff]  ;;  %p668_p3 = por %p667_p2, %p666_p1 }
  0x18   :  { %613 = vmatpush3.bf16.msra.mxu1 %v650_v21 }
  0x19   :  { %607 = vmatmul.mubr.msk.bf16.vlgmr.msra.gmra.mxu0 %vm218_vm2, %v201_v19  ;;  %614 = vmatprep.subr.bf16.mxu1 %v683_v1  ;;  %p669_p4 = pnand %p668_p3, %p662_p0 }
  0x1a   :  { %630 = vmatprep.mubr.msk.bf16.mxu0 %vm684_vm0, %v683_v1  ;;  %623 = vmatpush3.bf16.msra.mxu0 %v653_v13 }
  0x1b   :  { %624 = vmatprep.subr.bf16.mxu0 %v683_v1 }
  0x1c   :  { %615 = vmatpush3.bf16.msra.mxu1 %v651_v22 }
  0x1d   :  { %616 = vmatprep.subr.bf16.mxu1 %v683_v1 }
  0x1e   :  { %625 = vmatpush3.bf16.msra.mxu0 %v654_v14 }
  0x1f   :  { %626 = vmatprep.subr.bf16.mxu0 %v683_v1 }
  0x20   :  { %617 = vmatpush3.bf16.msra.mxu1 %v652_v23 }
  0x22   :  { %627 = vmatpush3.bf16.msra.mxu0 %v655_v15 }
  0x23   :  { %628 = vmatprep.subr.bf16.mxu0 %v683_v1 }
  0x26   :  { %629 = vmatpush3.bf16.msra.mxu0 %v656_v16 }
  0xd1   :  { %v124_v24 = vpop.f32.mrf.mxu0 }
  0xd2   :  { %v192_v25 = vpop.f32.mrf.mxu1 }
  0xd3   :  { %v588_v26 = vpop.f32.mrf.mxu0  ;;  %v193_v31 = vadd.f32 %v192_v25, %v124_v24 }
  0xd4   :  { %v600_v27 = vpop.f32.mrf.mxu1 }
  0xd5   :  { %v127_v28 = vpop.f32.mrf.mxu0 }
  0xd6   :  { %v195_v29 = vpop.f32.mrf.mxu1 }
  0xd7   :  { %v589_v30 = vpop.f32.mrf.mxu0  ;;  %v196_v37 = vadd.f32 %v195_v29, %v127_v28 }
  0xd8   :  { %v601_v32 = vpop.f32.mrf.mxu1 }
  0xd9   :  { %v256_v33 = vpop.f32.mrf.mxu0 }
  0xda   :  { %v263_v35 = vadd.f32 %v256_v33, %v193_v31 }
  0xdb   :  { %v608_v36 = vpop.f32.mrf.mxu0 }
  0xdc   :  { %v272_v38 = vadd.f32 %v542_v34, %v263_v35 }
  0xdd   :  { %v259_v39 = vpop.f32.mrf.mxu0 }
  0xde   :  { %v276_v40 = vmul.f32 0.01, %v272_v38  ;;  %v264_v41 = vadd.f32 %v259_v39, %v196_v37  ;;  %vm274_vm3 = vcmp.ge.f32.partialorder %v272_v38, 0.0 }
  0xdf   :  { %v609_v42 = vpop.f32.mrf.mxu0 }
  0xe0   :  { %v273_v43 = vadd.f32 %v542_v34, %v264_v41  ;;  %v278_v44 = vsel %vm274_vm3, %v272_v38, %v276_v40 }
  0xe1   :  { %v280_v47 = vsel %vm86_vm1, %v278_v44, 0.0 }
  0xe2   :  { %vm275_vm4 = vcmp.ge.f32.partialorder %v273_v43, 0.0  ;;  %v277_v45 = vmul.f32 0.01, %v273_v43 }
  0xe4   :  { %v279_v46 = vsel %vm275_vm4, %v273_v43, %v277_v45 }
  0xe5   :  { %v281_v48 = vsel %vm86_vm1, %v279_v46, 0.0 }
  0xe6   :  { %v282_v49 = vadd.f32 %v281_v48, %v280_v47 }
  0xe8   :  { %v283_v50 = vrot.slane %v282_v49, 4 }
  0xea   :  { %v284_v51 = vadd.f32 %v283_v50, %v282_v49 }
  0xec   :  { %v285_v52 = vrot.slane %v284_v51, 2 }
  0xee   :  { %v286_v53 = vadd.f32 %v285_v52, %v284_v51 }
  0xf0   :  { %v287_v54 = vrot.slane %v286_v53, 1 }
  0xf2   :  { %v288_v55 = vadd.f32 %v287_v54, %v286_v53 }
  0xf4   :  { %v290_v56 = vmul.f32 0.0625, %v288_v55 }
  0xf6   :  { %v291_v57 = vsub.f32 %v278_v44, %v290_v56  ;;  %v292_v58 = vsub.f32 %v279_v46, %v290_v56  ;;  %v549_v56 = vld [vmem:[%s885_s10] ss:$0 sm:$0xff] }
  0xf8   :  { %v293_v59 = vmul.f32 %v291_v57, %v291_v57  ;;  %v294_v60 = vmul.f32 %v292_v58, %v292_v58 }
  0xfa   :  { %v295_v61 = vsel %vm86_vm1, %v293_v59, 0.0  ;;  %v296_v62 = vsel %vm86_vm1, %v294_v60, 0.0 }
  0xfb   :  { %v297_v63 = vadd.f32 %v296_v62, %v295_v61 }
  0xfd   :  { %v298_v0 = vrot.slane %v297_v63, 4 }
  0xff   :  { %v299_v2 = vadd.f32 %v298_v0, %v297_v63 }
 0x101   :  { %v300_v3 = vrot.slane %v299_v2, 2 }
 0x103   :  { %v301_v4 = vadd.f32 %v300_v3, %v299_v2 }
 0x105   :  { %v302_v5 = vrot.slane %v301_v4, 1 }
 0x107   :  { %v303_v6 = vadd.f32 %v302_v5, %v301_v4 }
 0x109   :  { %v304_v7 = vmul.f32 0.0625, %v303_v6 }
 0x10b   :  { %v305_v8 = vadd.f32 1e-05, %v304_v7 }
 0x10d   :  { %657 = vrsqrt.f32 %v305_v8 }
 0x11a   :  { %v658_v9 = vpop.eup %657 }
 0x11b   :  { %v308_v10 = vmul.f32 %v658_v9, %v292_v58  ;;  %v307_v11 = vmul.f32 %v658_v9, %v291_v57 }
 0x11d   :  { %v309_v12 = vpack.c.bf16 %v308_v10, %v307_v11 }
 0x11f   :  { %619 = vmatmul.mubr.msk.bf16.vlgmr.msra.gmra.mxu1 %vm86_vm1, %v309_v12 }
 0x1df   :  { %v386_v18 = vpop.f32.mrf.mxu1 }
 0x1e0   :  { %v387_v19 = vadd.f32 %v543_v17, %v386_v18 }
 0x1e1   :  { %v620_v20 = vpop.f32.mrf.mxu1 }
 0x1e2   :  { %v395_v21 = vmul.f32 0.01, %v387_v19  ;;  %vm393_vm5 = vcmp.ge.f32.partialorder %v387_v19, 0.0 }
 0x1e3   :  { %v389_v22 = vpop.f32.mrf.mxu1 }
 0x1e4   :  { %v390_v23 = vadd.f32 %v543_v17, %v389_v22  ;;  %v397_v25 = vsel %vm393_vm5, %v387_v19, %v395_v21 }
 0x1e5   :  { %v621_v24 = vpop.f32.mrf.mxu1  ;;  %v399_v27 = vsel %vm86_vm1, %v397_v25, 0.0 }
 0x1e6   :  { %vm394_vm6 = vcmp.ge.f32.partialorder %v390_v23, 0.0  ;;  %v396_v1 = vmul.f32 0.01, %v390_v23 }
 0x1e8   :  { %v398_v26 = vsel %vm394_vm6, %v390_v23, %v396_v1 }
 0x1e9   :  { %v400_v28 = vsel %vm86_vm1, %v398_v26, 0.0 }
 0x1ea   :  { %v401_v29 = vadd.f32 %v400_v28, %v399_v27 }
 0x1ec   :  { %v402_v30 = vrot.slane %v401_v29, 4 }
 0x1ee   :  { %v403_v31 = vadd.f32 %v402_v30, %v401_v29 }
 0x1f0   :  { %v404_v32 = vrot.slane %v403_v31, 2 }
 0x1f2   :  { %v405_v33 = vadd.f32 %v404_v32, %v403_v31 }
 0x1f4   :  { %v406_v34 = vrot.slane %v405_v33, 1 }
 0x1f6   :  { %v407_v35 = vadd.f32 %v406_v34, %v405_v33 }
 0x1f8   :  { %v408_v36 = vmul.f32 0.0625, %v407_v35 }
 0x1fa   :  { %v409_v37 = vsub.f32 %v397_v25, %v408_v36  ;;  %v410_v38 = vsub.f32 %v398_v26, %v408_v36 }
 0x1fc   :  { %v411_v39 = vmul.f32 %v409_v37, %v409_v37  ;;  %v412_v40 = vmul.f32 %v410_v38, %v410_v38 }
 0x1fe   :  { %v413_v41 = vsel %vm86_vm1, %v411_v39, 0.0  ;;  %v414_v42 = vsel %vm86_vm1, %v412_v40, 0.0 }
 0x1ff   :  { %v415_v43 = vadd.f32 %v414_v42, %v413_v41 }
 0x201   :  { %v416_v44 = vrot.slane %v415_v43, 4 }
 0x203   :  { %v417_v45 = vadd.f32 %v416_v44, %v415_v43 }
 0x205   :  { %v418_v46 = vrot.slane %v417_v45, 2 }
 0x207   :  { %v419_v47 = vadd.f32 %v418_v46, %v417_v45 }
 0x209   :  { %v420_v48 = vrot.slane %v419_v47, 1 }
 0x20b   :  { %v421_v49 = vadd.f32 %v420_v48, %v419_v47 }
 0x20d   :  { %v422_v50 = vmul.f32 0.0625, %v421_v49 }
 0x20f   :  { %v423_v51 = vadd.f32 1e-05, %v422_v50 }
 0x211   :  { %659 = vrsqrt.f32 %v423_v51 }
 0x21e   :  { %v660_v52 = vpop.eup %659 }
 0x21f   :  { %v425_v53 = vmul.f32 %v660_v52, %v409_v37  ;;  %v426_v54 = vmul.f32 %v660_v52, %v410_v38 }
 0x221   :  { %v427_v55 = vpack.c.bf16 %v426_v54, %v425_v53 }
 0x223   :  { %631 = vmatmul.mubr.msk.bf16.vlgmr.msra.gmra.mxu0 %vm86_vm1, %v427_v55 }
 0x2e3   :  { %v504_v57 = vpop.f32.mrf.mxu0 }
 0x2e4   :  { %v505_v58 = vadd.f32 %v549_v56, %v504_v57 }
 0x2e5   :  { %v632_v59 = vpop.f32.mrf.mxu0 }
 0x2e6   :  { %511 = vst.msk [vmem:[#allocation2] sm:$0xff] %vm218_vm2, %v505_v58 }
 0x2e7   :  { %v507_v60 = vpop.f32.mrf.mxu0 }
 0x2e8   :  { %v508_v61 = vadd.f32 %v549_v56, %v507_v60 }
 0x2e9   :  { %v633_v62 = vpop.f32.mrf.mxu0 }
 0x2ea   :  { %512 = vst.msk [vmem:[#allocation2 + $0x8] sm:$0xff] %vm218_vm2, %v508_v61 }
 0x2eb   :  { %672 = shalt.err (!%p669_p4)
}
 0x2ec   :  { %s686_s10 = smov 128   ;;  %s687_s22 = smov 8  }
 0x2ed   :  { %524 = dma.vmem_to_hbm [thread:$0]  %s519_s0, 256, %s886_s11, [#allocation3], %s686_s10, %s686_s10, %s687_s22  }
 0x2ee   :  { %681 = dma.done.wait [#allocation3], 256  }
 0x2ef   :  { %682 = vsyncadd [#allocation3], 4294967040 }
 0x2f0   :  { %528 = vsyncpa [#allocation3], 1 }

</bundles_post_ra>
